<compile_context>
chip_gen: v6e
topology: v6e:2x2x1
jax: 0.10.0
libtpu: 0.0.40
codegen_flags: <defaults>
</compile_context>

<pallas_src>
import functools

import jax
import jax.numpy as jnp
import numpy as np
from jax import lax
from jax.experimental import pallas as pl
from jax.experimental.pallas import tpu as pltpu

NEG_SLOPE = 0.1
BN_EPS = 1e-5
DIL1 = 2  # conv1: padding=2, dilation=2
DIL2 = 4  # conv2: padding=4, dilation=4


def _round_up(a, b):
    return (a + b - 1) // b * b


# ----------------------------------------------------------------------------
# Fused Pallas kernel (one lane-block of images per grid step)
# ----------------------------------------------------------------------------
def _bottleneck_kernel(x_ref, msk_ref, w12_ref, w3c_ref, tb_ref, o_ref, *,
                       H, W, ipb, cmid_p, cout, c2,
                       k1, w2_off, k2, wc_off, mxu_dtype):
    """Fused Bottleneck forward, channels on sublanes / (batch*H*W) on lanes.

    x_ref  : (Cin_p, L)           input, L = ipb*H*W lanes (ipb images folded)
    msk_ref: (8+ipb, L)           rows 0-3: conv1 [r>=d, r<H-d, c>=d, c<W-d],
                                  rows 4-7: conv2 masks, rows 8..: per-image
                                  segment indicators
    w12_ref: (Cout, w2_off + k2)  folded conv1 weights at [0:k1), conv2 at
                                  [w2_off:w2_off+k2) (128-lane aligned)
    w3c_ref: (C2, wc_off + C2)    folded 1x1 conv3 at [0:Cout), context conv at
                                  [wc_off:wc_off+C2)
    tb_ref : (max(Cout,C2), 4)    bias columns [t1, t2, t3, bc]
    o_ref  : (C2, L)
    """
    HW = H * W
    L = ipb * HW

    msk = msk_ref[...]
    x = x_ref[...]

    def leaky(y):
        return jnp.where(y >= 0, y, NEG_SLOPE * y)

    def conv3x3(xin, w, t, m4, d):
        # "same" 3x3 conv with dilation d, one MXU matmul.  Each tap is a
        # lane-roll of the flat (C, L) tile; invalid positions (image border,
        # cross-image reads, roll wrap-around) are zeroed by the masks.
        row_m = {-1: m4[0:1, :], 0: None, 1: m4[1:2, :]}
        col_m = {-1: m4[2:3, :], 0: None, 1: m4[3:4, :]}
        patches = []
        for ky in (-1, 0, 1):
            rm = row_m[ky]
            for kx in (-1, 0, 1):
                cm = col_m[kx]
                off = (ky * W + kx) * d
                p = xin if off == 0 else pltpu.roll(xin, shift=(-off) % L, axis=1)
                if rm is not None:
                    p = p * rm
                if cm is not None:
                    p = p * cm
                patches.append(p)
        rhs = jnp.concatenate(patches, axis=0)               # (9*Cp, L), 8-aligned
        y = jnp.dot(w.astype(mxu_dtype), rhs.astype(mxu_dtype),
                    preferred_element_type=jnp.float32) + t
        return leaky(y)

    # Packed operands -> per-layer views.
    t1 = tb_ref[0:cout, 0:1]
    t2 = tb_ref[0:cout, 1:2]
    t3 = tb_ref[0:c2, 2:3]
    bc = tb_ref[0:c2, 3:4]
    w1 = w12_ref[:, 0:k1]
    w2 = w12_ref[:, w2_off:w2_off + k2]
    w3 = w3c_ref[:, 0:cout]
    wc = w3c_ref[:, wc_off:wc_off + c2]

    # conv1 + bn1 + act, conv2 + bn2 + act.
    x1 = conv3x3(x, w1, t1, msk[0:4, :], DIL1)               # (Cout, L)
    if cmid_p > cout:  # keep the second im2col stack 8-sublane aligned
        x1 = jnp.concatenate(
            [x1, jnp.zeros((cmid_p - cout, L), jnp.float32)], axis=0)
    x2 = conv3x3(x1, w2, t2, msk[4:8, :], DIL2)              # (Cout, L)

    # 1x1 conv3 + bn3 + act.
    y3 = leaky(jnp.dot(w3, x2, preferred_element_type=jnp.float32) + t3)  # (C2, L)

    # Global context, per image: mean over H*W -> (C2,C2) matvec -> broadcast.
    seg = msk[8:8 + ipb, :]                                  # (ipb, L) indicators
    sums = lax.dot_general(y3, seg, (((1,), (1,)), ((), ())),
                           preferred_element_type=jnp.float32)            # (C2, ipb)
    gc = jnp.dot(wc, sums * (1.0 / HW),
                 preferred_element_type=jnp.float32) + bc                  # (C2, ipb)
    gc_full = jnp.dot(gc, seg, preferred_element_type=jnp.float32)         # (C2, L)

    o_ref[...] = (y3 + gc_full).astype(o_ref.dtype)


# ----------------------------------------------------------------------------
# Wrapper: BN folding, operand packing, pallas_call glue
# ----------------------------------------------------------------------------
def _fold_bn(conv_bias, gamma, beta, mean, var):
    s = gamma / jnp.sqrt(var + BN_EPS)
    t = beta + s * (conv_bias - mean)
    return s, t


def _fold_conv3x3_bn(w, b, g, be, m, v, cin_pad):
    # (O, I, 3, 3) -> (O, 9*cin_pad) with K ordered (ky, kx, ci); BN scale
    # folded into W; padded input channels get zero weight columns.
    O, I = w.shape[0], w.shape[1]
    s, t = _fold_bn(b, g, be, m, v)
    wpad = jnp.zeros((O, cin_pad, 3, 3), jnp.float32).at[:, :I].set(w)
    wf = jnp.transpose(wpad, (0, 2, 3, 1)).reshape(O, 9 * cin_pad) * s[:, None]
    return wf.astype(jnp.float32), t.astype(jnp.float32)


def _fold_conv1x1_bn(w, b, g, be, m, v):
    s, t = _fold_bn(b, g, be, m, v)
    wf = w[:, :, 0, 0] * s[:, None]
    return wf.astype(jnp.float32), t.astype(jnp.float32)


def _build_masks(H, W, ipb):
    # (8 + ipb, ipb*H*W) f32: per-dilation row/col validity + per-image
    # segment indicators, all at lane-block width so the kernel never needs
    # integer div/mod or a second DMA per conv.
    hw = H * W
    L = ipb * hw
    pos = np.arange(L) % hw
    r = pos // W
    c = pos % W
    rows = []
    for d in (DIL1, DIL2):
        rows += [(r >= d), (r < H - d), (c >= d), (c < W - d)]
    img = np.arange(L) // hw
    for g in range(ipb):
        rows.append(img == g)
    return jnp.asarray(np.stack(rows).astype(np.float32))


def _pick_ipb(n, hw, max_lanes):
    # Largest divisor of N whose lane block fits the budget.
    best = 1
    for d in range(1, n + 1):
        if n % d == 0 and d * hw <= max_lanes:
            best = d
    if best < n and (best * hw) % 128 != 0:
        best = n  # lane blocks must be 128-aligned unless they span the array
    return best


def bottleneck_forward(x_nchw, p, *, mxu_dtype=jnp.float32, max_block_lanes=4096):
    """Full Bottleneck forward.  Input/output are NCHW to match PyTorch."""
    N, Cin, H, W = x_nchw.shape
    Cout = p["w1"].shape[0]
    C2 = p["w3"].shape[0]
    HW = H * W
    cin_p = _round_up(Cin, 8)
    cmid_p = _round_up(Cout, 8)

    ipb = _pick_ipb(N, HW, max_block_lanes)   # images folded per lane block
    L = ipb * HW
    G = N // ipb

    # Channels-major with the batch folded onto lanes: (Cin, N*H*W).
    # (Layout plumbing stays in the XLA wrapper; the kernel sees lane-dense tiles.)
    x = jnp.transpose(x_nchw.astype(jnp.float32), (1, 0, 2, 3)).reshape(Cin, N * HW)
    if cin_p > Cin:
        x = jnp.concatenate([x, jnp.zeros((cin_p - Cin, N * HW), jnp.float32)], axis=0)

    w1f, t1 = _fold_conv3x3_bn(p["w1"], p["b1"], p["g1"], p["be1"], p["m1"], p["v1"], cin_p)
    w2f, t2 = _fold_conv3x3_bn(p["w2"], p["b2"], p["g2"], p["be2"], p["m2"], p["v2"], cmid_p)
    w3f, t3 = _fold_conv1x1_bn(p["w3"], p["b3"], p["g3"], p["be3"], p["m3"], p["v3"])
    wcf = p["wc"][:, :, 0, 0].astype(jnp.float32)
    bcf = p["bc"].astype(jnp.float32)

    # Pack conv1|conv2 weights into one 128-lane-aligned slab.
    k1, k2 = 9 * cin_p, 9 * cmid_p
    w2_off = _round_up(k1, 128)
    w12 = jnp.zeros((Cout, w2_off + k2), jnp.float32)
    w12 = w12.at[:, :k1].set(w1f).at[:, w2_off:w2_off + k2].set(w2f)

    # Pack conv3|context weights into one slab.
    wc_off = _round_up(Cout, 128)
    w3c = jnp.zeros((C2, wc_off + C2), jnp.float32)
    w3c = w3c.at[:, :Cout].set(w3f).at[:, wc_off:wc_off + C2].set(wcf)

    # Pack all biases into one tiny operand (columns: t1, t2, t3, bc).
    cmax = max(Cout, C2)
    tb = jnp.zeros((cmax, 4), jnp.float32)
    tb = tb.at[:Cout, 0].set(t1).at[:Cout, 1].set(t2).at[:C2, 2].set(t3).at[:C2, 3].set(bcf)

    msk = _build_masks(H, W, ipb)            # (8 + ipb, L)

    kernel = functools.partial(
        _bottleneck_kernel, H=H, W=W, ipb=ipb, cmid_p=cmid_p, cout=Cout, c2=C2,
        k1=k1, w2_off=w2_off, k2=k2, wc_off=wc_off, mxu_dtype=mxu_dtype)

    rep = lambda g: (0, 0)  # weights / masks / biases: same block every step
    out = pl.pallas_call(
        kernel,
        out_shape=jax.ShapeDtypeStruct((C2, N * HW), jnp.float32),
        grid=(G,),
        in_specs=[
            pl.BlockSpec((cin_p, L), lambda g: (0, g)),      # x (lane block g)
            pl.BlockSpec(msk.shape, rep),                    # masks + seg
            pl.BlockSpec(w12.shape, rep),                    # w1|w2 (folded BN)
            pl.BlockSpec(w3c.shape, rep),                    # w3|wc (folded BN)
            pl.BlockSpec(tb.shape, rep),                     # biases
        ],
        out_specs=pl.BlockSpec((C2, L), lambda g: (0, g)),
        compiler_params=pltpu.CompilerParams(
            dimension_semantics=("parallel",),
            vmem_limit_bytes=32 * 1024 * 1024,
        ),
    )(x, msk, w12, w3c, tb)

    return jnp.transpose(out.reshape(C2, N, H, W), (1, 0, 2, 3))


# ----------------------------------------------------------------------------
# Pure-JAX reference (for correctness check)
# ----------------------------------------------------------------------------
def ref_forward(x_nchw, p):
    def conv(x, w, b, pad, dil):
        y = lax.conv_general_dilated(
            x, w, window_strides=(1, 1), padding=[(pad, pad), (pad, pad)],
            rhs_dilation=(dil, dil),
            dimension_numbers=("NCHW", "OIHW", "NCHW"),
            precision=lax.Precision.HIGHEST)
        return y + b[None, :, None, None]

    def bn(x, g, b, m, v):
        return (g[None, :, None, None] * (x - m[None, :, None, None])
                / jnp.sqrt(v[None, :, None, None] + BN_EPS)
                + b[None, :, None, None])

    def act(x):
        return jnp.where(x >= 0, x, NEG_SLOPE * x)

    x = act(bn(conv(x_nchw, p["w1"], p["b1"], 2, 2), p["g1"], p["be1"], p["m1"], p["v1"]))
    x = act(bn(conv(x, p["w2"], p["b2"], 4, 4), p["g2"], p["be2"], p["m2"], p["v2"]))
    x3 = act(bn(conv(x, p["w3"], p["b3"], 0, 1), p["g3"], p["be3"], p["m3"], p["v3"]))
    gc = jnp.mean(x3, axis=(2, 3), keepdims=True)
    gc = conv(gc, p["wc"], p["bc"], 0, 1)
    return x3 + gc


# ----------------------------------------------------------------------------
# Deterministic parameter init (PyTorch-style shapes)
# ----------------------------------------------------------------------------
def init_params(key, cin, cout):
    c2 = cout // 2
    keys = iter(jax.random.split(key, 24))

    def conv_params(o, i, k):
        bound = 1.0 / float(np.sqrt(i * k * k))
        w = jax.random.uniform(next(keys), (o, i, k, k), jnp.float32, -bound, bound)
        b = jax.random.uniform(next(keys), (o,), jnp.float32, -bound, bound)
        return w, b

    def bn_params(c):
        g = jax.random.uniform(next(keys), (c,), jnp.float32, 0.5, 1.5)
        be = 0.1 * jax.random.normal(next(keys), (c,), jnp.float32)
        m = 0.1 * jax.random.normal(next(keys), (c,), jnp.float32)
        v = jax.random.uniform(next(keys), (c,), jnp.float32, 0.5, 1.5)
        return g, be, m, v

    p = {}
    p["w1"], p["b1"] = conv_params(cout, cin, 3)   # conv1
    p["w2"], p["b2"] = conv_params(cout, cout, 3)  # conv2
    p["w3"], p["b3"] = conv_params(c2, cout, 1)    # conv3
    p["wc"], p["bc"] = conv_params(c2, c2, 1)      # context_conv
    p["g1"], p["be1"], p["m1"], p["v1"] = bn_params(cout)
    p["g2"], p["be2"], p["m2"], p["v2"] = bn_params(cout)
    p["g3"], p["be3"], p["m3"], p["v3"] = bn_params(c2)
    return p


if __name__ == "__main__":
    N, CIN, COUT, H, W = 2, 4, 8, 16, 16
    key = jax.random.PRNGKey(0)
    kx_, kp_ = jax.random.split(key)
    x = jax.random.normal(kx_, (N, CIN, H, W), jnp.float32)
    params = init_params(kp_, CIN, COUT)

    out = jax.block_until_ready(bottleneck_forward(x, params))
    ref = jax.block_until_ready(ref_forward(x, params))

    assert out.shape == (N, COUT // 2, H, W), out.shape
    np.testing.assert_allclose(np.asarray(out), np.asarray(ref), rtol=2e-2, atol=2e-2)
    print("KERNEL_OK")
</pallas_src>

<mosaic_0001>
module attributes {stable_mosaic.version = 11 : i64} {
  func.func @_bottleneck_kernel(%arg0: i32, %arg1: memref<8x512xf32, #tpu.memory_space<vmem>>, %arg2: memref<10x512xf32, #tpu.memory_space<vmem>>, %arg3: memref<8x200xf32, #tpu.memory_space<vmem>>, %arg4: memref<4x132xf32, #tpu.memory_space<vmem>>, %arg5: memref<8x4xf32, #tpu.memory_space<vmem>>, %arg6: memref<4x512xf32, #tpu.memory_space<vmem>>) attributes {dimension_semantics = [#tpu.dimension_semantics<parallel>], iteration_bounds = array<i64: 1>, scalar_prefetch = 0 : i64, scratch_operands = 0 : i64, tpu.core_type = #tpu.core_type<tc>, window_params = [{transform_indices = @transform_0, window_bounds = array<i64: 8, 512>}, {pipeline_mode = #tpu.pipeline_mode<synchronous>, transform_indices = @transform_1, window_bounds = array<i64: 10, 512>}, {pipeline_mode = #tpu.pipeline_mode<synchronous>, transform_indices = @transform_2, window_bounds = array<i64: 8, 200>}, {pipeline_mode = #tpu.pipeline_mode<synchronous>, transform_indices = @transform_3, window_bounds = array<i64: 4, 132>}, {pipeline_mode = #tpu.pipeline_mode<synchronous>, transform_indices = @transform_4, window_bounds = array<i64: 8, 4>}, {transform_indices = @transform_5, window_bounds = array<i64: 4, 512>}]} {
    %c0 = arith.constant 0 : index
    %c0_0 = arith.constant 0 : index
    %0 = vector.load %arg2[%c0, %c0_0] : memref<10x512xf32, #tpu.memory_space<vmem>>, vector<10x512xf32>
    %c0_1 = arith.constant 0 : index
    %c0_2 = arith.constant 0 : index
    %1 = vector.load %arg1[%c0_1, %c0_2] : memref<8x512xf32, #tpu.memory_space<vmem>>, vector<8x512xf32>
    %c0_3 = arith.constant 0 : index
    %c0_4 = arith.constant 0 : index
    %2 = vector.load %arg5[%c0_3, %c0_4] : memref<8x4xf32, #tpu.memory_space<vmem>>, vector<8x1xf32>
    %c0_5 = arith.constant 0 : index
    %c1 = arith.constant 1 : index
    %3 = vector.load %arg5[%c0_5, %c1] : memref<8x4xf32, #tpu.memory_space<vmem>>, vector<8x1xf32>
    %c0_6 = arith.constant 0 : index
    %c2 = arith.constant 2 : index
    %4 = vector.load %arg5[%c0_6, %c2] : memref<8x4xf32, #tpu.memory_space<vmem>>, vector<4x1xf32>
    %c0_7 = arith.constant 0 : index
    %c3 = arith.constant 3 : index
    %5 = vector.load %arg5[%c0_7, %c3] : memref<8x4xf32, #tpu.memory_space<vmem>>, vector<4x1xf32>
    %c0_8 = arith.constant 0 : index
    %c0_9 = arith.constant 0 : index
    %6 = vector.load %arg3[%c0_8, %c0_9] : memref<8x200xf32, #tpu.memory_space<vmem>>, vector<8x72xf32>
    %c0_10 = arith.constant 0 : index
    %c128 = arith.constant 128 : index
    %7 = vector.load %arg3[%c0_10, %c128] : memref<8x200xf32, #tpu.memory_space<vmem>>, vector<8x72xf32>
    %c0_11 = arith.constant 0 : index
    %c0_12 = arith.constant 0 : index
    %8 = vector.load %arg4[%c0_11, %c0_12] : memref<4x132xf32, #tpu.memory_space<vmem>>, vector<4x8xf32>
    %c0_13 = arith.constant 0 : index
    %c128_14 = arith.constant 128 : index
    %9 = vector.load %arg4[%c0_13, %c128_14] : memref<4x132xf32, #tpu.memory_space<vmem>>, vector<4x4xf32>
    %10 = vector.extract_strided_slice %0 {offsets = [0, 0], sizes = [4, 512], strides = [1, 1]} : vector<10x512xf32> to vector<4x512xf32>
    %11 = vector.extract_strided_slice %10 {offsets = [0, 0], sizes = [1, 512], strides = [1, 1]} : vector<4x512xf32> to vector<1x512xf32>
    %12 = vector.extract_strided_slice %10 {offsets = [1, 0], sizes = [1, 512], strides = [1, 1]} : vector<4x512xf32> to vector<1x512xf32>
    %13 = vector.extract_strided_slice %10 {offsets = [2, 0], sizes = [1, 512], strides = [1, 1]} : vector<4x512xf32> to vector<1x512xf32>
    %14 = vector.extract_strided_slice %10 {offsets = [3, 0], sizes = [1, 512], strides = [1, 1]} : vector<4x512xf32> to vector<1x512xf32>
    %c34_i32 = arith.constant 34 : i32
    %15 = tpu.dynamic_rotate %1 by %c34_i32 dim 1 : vector<8x512xf32>, i32 -> vector<8x512xf32>
    %16 = vector.broadcast %11 : vector<1x512xf32> to vector<8x512xf32>
    %17 = arith.mulf %15, %16 : vector<8x512xf32>
    %18 = vector.broadcast %13 : vector<1x512xf32> to vector<8x512xf32>
    %19 = arith.mulf %17, %18 : vector<8x512xf32>
    %c32_i32 = arith.constant 32 : i32
    %20 = tpu.dynamic_rotate %1 by %c32_i32 dim 1 : vector<8x512xf32>, i32 -> vector<8x512xf32>
    %21 = vector.broadcast %11 : vector<1x512xf32> to vector<8x512xf32>
    %22 = arith.mulf %20, %21 : vector<8x512xf32>
    %c30_i32 = arith.constant 30 : i32
    %23 = tpu.dynamic_rotate %1 by %c30_i32 dim 1 : vector<8x512xf32>, i32 -> vector<8x512xf32>
    %24 = vector.broadcast %11 : vector<1x512xf32> to vector<8x512xf32>
    %25 = arith.mulf %23, %24 : vector<8x512xf32>
    %26 = vector.broadcast %14 : vector<1x512xf32> to vector<8x512xf32>
    %27 = arith.mulf %25, %26 : vector<8x512xf32>
    %c2_i32 = arith.constant 2 : i32
    %28 = tpu.dynamic_rotate %1 by %c2_i32 dim 1 : vector<8x512xf32>, i32 -> vector<8x512xf32>
    %29 = vector.broadcast %13 : vector<1x512xf32> to vector<8x512xf32>
    %30 = arith.mulf %28, %29 : vector<8x512xf32>
    %c510_i32 = arith.constant 510 : i32
    %31 = tpu.dynamic_rotate %1 by %c510_i32 dim 1 : vector<8x512xf32>, i32 -> vector<8x512xf32>
    %32 = vector.broadcast %14 : vector<1x512xf32> to vector<8x512xf32>
    %33 = arith.mulf %31, %32 : vector<8x512xf32>
    %c482_i32 = arith.constant 482 : i32
    %34 = tpu.dynamic_rotate %1 by %c482_i32 dim 1 : vector<8x512xf32>, i32 -> vector<8x512xf32>
    %35 = vector.broadcast %12 : vector<1x512xf32> to vector<8x512xf32>
    %36 = arith.mulf %34, %35 : vector<8x512xf32>
    %37 = vector.broadcast %13 : vector<1x512xf32> to vector<8x512xf32>
    %38 = arith.mulf %36, %37 : vector<8x512xf32>
    %c480_i32 = arith.constant 480 : i32
    %39 = tpu.dynamic_rotate %1 by %c480_i32 dim 1 : vector<8x512xf32>, i32 -> vector<8x512xf32>
    %40 = vector.broadcast %12 : vector<1x512xf32> to vector<8x512xf32>
    %41 = arith.mulf %39, %40 : vector<8x512xf32>
    %c478_i32 = arith.constant 478 : i32
    %42 = tpu.dynamic_rotate %1 by %c478_i32 dim 1 : vector<8x512xf32>, i32 -> vector<8x512xf32>
    %43 = vector.broadcast %12 : vector<1x512xf32> to vector<8x512xf32>
    %44 = arith.mulf %42, %43 : vector<8x512xf32>
    %45 = vector.broadcast %14 : vector<1x512xf32> to vector<8x512xf32>
    %46 = arith.mulf %44, %45 : vector<8x512xf32>
    %47 = tpu.concatenate %19, %22, %27, %30, %1, %33, %38, %41, %46 in 0 : vector<8x512xf32>, vector<8x512xf32>, vector<8x512xf32>, vector<8x512xf32>, vector<8x512xf32>, vector<8x512xf32>, vector<8x512xf32>, vector<8x512xf32>, vector<8x512xf32> -> vector<72x512xf32>
    %cst = arith.constant dense<0.000000e+00> : vector<8x512xf32>
    %48 = tpu.matmul %6, %47, %cst {dimension_numbers = #tpu.dot_dimension_numbers<[1], [0], [0], [1], [0, 0, 1, 1], [], []>} : vector<8x72xf32>, vector<72x512xf32>, vector<8x512xf32> -> vector<8x512xf32>
    %49 = vector.broadcast %2 : vector<8x1xf32> to vector<8x512xf32>
    %50 = arith.addf %48, %49 : vector<8x512xf32>
    %cst_15 = arith.constant 0.000000e+00 : f32
    %51 = vector.broadcast %cst_15 : f32 to vector<8x512xf32>
    %52 = arith.cmpf oge, %50, %51 : vector<8x512xf32>
    %cst_16 = arith.constant 1.000000e-01 : f32
    %53 = vector.broadcast %cst_16 : f32 to vector<8x512xf32>
    %54 = arith.mulf %53, %50 : vector<8x512xf32>
    %55 = arith.select %52, %50, %54 : vector<8x512xi1>, vector<8x512xf32>
    %56 = vector.extract_strided_slice %0 {offsets = [4, 0], sizes = [4, 512], strides = [1, 1]} : vector<10x512xf32> to vector<4x512xf32>
    %57 = vector.extract_strided_slice %56 {offsets = [0, 0], sizes = [1, 512], strides = [1, 1]} : vector<4x512xf32> to vector<1x512xf32>
    %58 = vector.extract_strided_slice %56 {offsets = [1, 0], sizes = [1, 512], strides = [1, 1]} : vector<4x512xf32> to vector<1x512xf32>
    %59 = vector.extract_strided_slice %56 {offsets = [2, 0], sizes = [1, 512], strides = [1, 1]} : vector<4x512xf32> to vector<1x512xf32>
    %60 = vector.extract_strided_slice %56 {offsets = [3, 0], sizes = [1, 512], strides = [1, 1]} : vector<4x512xf32> to vector<1x512xf32>
    %c68_i32 = arith.constant 68 : i32
    %61 = tpu.dynamic_rotate %55 by %c68_i32 dim 1 : vector<8x512xf32>, i32 -> vector<8x512xf32>
    %62 = vector.broadcast %57 : vector<1x512xf32> to vector<8x512xf32>
    %63 = arith.mulf %61, %62 : vector<8x512xf32>
    %64 = vector.broadcast %59 : vector<1x512xf32> to vector<8x512xf32>
    %65 = arith.mulf %63, %64 : vector<8x512xf32>
    %c64_i32 = arith.constant 64 : i32
    %66 = tpu.dynamic_rotate %55 by %c64_i32 dim 1 : vector<8x512xf32>, i32 -> vector<8x512xf32>
    %67 = vector.broadcast %57 : vector<1x512xf32> to vector<8x512xf32>
    %68 = arith.mulf %66, %67 : vector<8x512xf32>
    %c60_i32 = arith.constant 60 : i32
    %69 = tpu.dynamic_rotate %55 by %c60_i32 dim 1 : vector<8x512xf32>, i32 -> vector<8x512xf32>
    %70 = vector.broadcast %57 : vector<1x512xf32> to vector<8x512xf32>
    %71 = arith.mulf %69, %70 : vector<8x512xf32>
    %72 = vector.broadcast %60 : vector<1x512xf32> to vector<8x512xf32>
    %73 = arith.mulf %71, %72 : vector<8x512xf32>
    %c4_i32 = arith.constant 4 : i32
    %74 = tpu.dynamic_rotate %55 by %c4_i32 dim 1 : vector<8x512xf32>, i32 -> vector<8x512xf32>
    %75 = vector.broadcast %59 : vector<1x512xf32> to vector<8x512xf32>
    %76 = arith.mulf %74, %75 : vector<8x512xf32>
    %c508_i32 = arith.constant 508 : i32
    %77 = tpu.dynamic_rotate %55 by %c508_i32 dim 1 : vector<8x512xf32>, i32 -> vector<8x512xf32>
    %78 = vector.broadcast %60 : vector<1x512xf32> to vector<8x512xf32>
    %79 = arith.mulf %77, %78 : vector<8x512xf32>
    %c452_i32 = arith.constant 452 : i32
    %80 = tpu.dynamic_rotate %55 by %c452_i32 dim 1 : vector<8x512xf32>, i32 -> vector<8x512xf32>
    %81 = vector.broadcast %58 : vector<1x512xf32> to vector<8x512xf32>
    %82 = arith.mulf %80, %81 : vector<8x512xf32>
    %83 = vector.broadcast %59 : vector<1x512xf32> to vector<8x512xf32>
    %84 = arith.mulf %82, %83 : vector<8x512xf32>
    %c448_i32 = arith.constant 448 : i32
    %85 = tpu.dynamic_rotate %55 by %c448_i32 dim 1 : vector<8x512xf32>, i32 -> vector<8x512xf32>
    %86 = vector.broadcast %58 : vector<1x512xf32> to vector<8x512xf32>
    %87 = arith.mulf %85, %86 : vector<8x512xf32>
    %c444_i32 = arith.constant 444 : i32
    %88 = tpu.dynamic_rotate %55 by %c444_i32 dim 1 : vector<8x512xf32>, i32 -> vector<8x512xf32>
    %89 = vector.broadcast %58 : vector<1x512xf32> to vector<8x512xf32>
    %90 = arith.mulf %88, %89 : vector<8x512xf32>
    %91 = vector.broadcast %60 : vector<1x512xf32> to vector<8x512xf32>
    %92 = arith.mulf %90, %91 : vector<8x512xf32>
    %93 = tpu.concatenate %65, %68, %73, %76, %55, %79, %84, %87, %92 in 0 : vector<8x512xf32>, vector<8x512xf32>, vector<8x512xf32>, vector<8x512xf32>, vector<8x512xf32>, vector<8x512xf32>, vector<8x512xf32>, vector<8x512xf32>, vector<8x512xf32> -> vector<72x512xf32>
    %cst_17 = arith.constant dense<0.000000e+00> : vector<8x512xf32>
    %94 = tpu.matmul %7, %93, %cst_17 {dimension_numbers = #tpu.dot_dimension_numbers<[1], [0], [0], [1], [0, 0, 1, 1], [], []>} : vector<8x72xf32>, vector<72x512xf32>, vector<8x512xf32> -> vector<8x512xf32>
    %95 = vector.broadcast %3 : vector<8x1xf32> to vector<8x512xf32>
    %96 = arith.addf %94, %95 : vector<8x512xf32>
    %cst_18 = arith.constant 0.000000e+00 : f32
    %97 = vector.broadcast %cst_18 : f32 to vector<8x512xf32>
    %98 = arith.cmpf oge, %96, %97 : vector<8x512xf32>
    %cst_19 = arith.constant 1.000000e-01 : f32
    %99 = vector.broadcast %cst_19 : f32 to vector<8x512xf32>
    %100 = arith.mulf %99, %96 : vector<8x512xf32>
    %101 = arith.select %98, %96, %100 : vector<8x512xi1>, vector<8x512xf32>
    %cst_20 = arith.constant dense<0.000000e+00> : vector<4x512xf32>
    %102 = tpu.matmul %8, %101, %cst_20 {dimension_numbers = #tpu.dot_dimension_numbers<[1], [0], [0], [1], [0, 0, 1, 1], [], []>} : vector<4x8xf32>, vector<8x512xf32>, vector<4x512xf32> -> vector<4x512xf32>
    %103 = vector.broadcast %4 : vector<4x1xf32> to vector<4x512xf32>
    %104 = arith.addf %102, %103 : vector<4x512xf32>
    %cst_21 = arith.constant 0.000000e+00 : f32
    %105 = vector.broadcast %cst_21 : f32 to vector<4x512xf32>
    %106 = arith.cmpf oge, %104, %105 : vector<4x512xf32>
    %cst_22 = arith.constant 1.000000e-01 : f32
    %107 = vector.broadcast %cst_22 : f32 to vector<4x512xf32>
    %108 = arith.mulf %107, %104 : vector<4x512xf32>
    %109 = arith.select %106, %104, %108 : vector<4x512xi1>, vector<4x512xf32>
    %110 = vector.extract_strided_slice %0 {offsets = [8, 0], sizes = [2, 512], strides = [1, 1]} : vector<10x512xf32> to vector<2x512xf32>
    %cst_23 = arith.constant dense<0.000000e+00> : vector<4x2xf32>
    %111 = tpu.matmul %109, %110, %cst_23 {dimension_numbers = #tpu.dot_dimension_numbers<[1], [1], [0], [0], [0, 0, 1, 0], [], []>} : vector<4x512xf32>, vector<2x512xf32>, vector<4x2xf32> -> vector<4x2xf32>
    %cst_24 = arith.constant 3.906250e-03 : f32
    %112 = vector.broadcast %cst_24 : f32 to vector<4x2xf32>
    %113 = arith.mulf %111, %112 : vector<4x2xf32>
    %cst_25 = arith.constant dense<0.000000e+00> : vector<4x2xf32>
    %114 = tpu.matmul %9, %113, %cst_25 {dimension_numbers = #tpu.dot_dimension_numbers<[1], [0], [0], [1], [0, 0, 1, 1], [], []>} : vector<4x4xf32>, vector<4x2xf32>, vector<4x2xf32> -> vector<4x2xf32>
    %115 = vector.broadcast %5 : vector<4x1xf32> to vector<4x2xf32>
    %116 = arith.addf %114, %115 : vector<4x2xf32>
    %cst_26 = arith.constant dense<0.000000e+00> : vector<4x512xf32>
    %117 = tpu.matmul %116, %110, %cst_26 {dimension_numbers = #tpu.dot_dimension_numbers<[1], [0], [0], [1], [0, 0, 1, 1], [], []>} : vector<4x2xf32>, vector<2x512xf32>, vector<4x512xf32> -> vector<4x512xf32>
    %118 = arith.addf %109, %117 : vector<4x512xf32>
    %c0_27 = arith.constant 0 : index
    %c0_28 = arith.constant 0 : index
    %119 = vector.load %arg6[%c0_27, %c0_28] : memref<4x512xf32, #tpu.memory_space<vmem>>, vector<4x512xf32>
    tpu.vector_store %arg6[%c0_27, %c0_28], %118 {strides = array<i32>} : memref<4x512xf32, #tpu.memory_space<vmem>>, vector<4x512xf32>,
    return
  }
  func.func @transform_0(%arg0: i32) -> (i32, i32) {
    %c0_i32 = arith.constant 0 : i32
    %c0_i32_0 = arith.constant 0 : i32
    return %c0_i32, %arg0 : i32, i32
  }
  func.func @transform_1(%arg0: i32) -> (i32, i32) {
    %c0_i32 = arith.constant 0 : i32
    %c0_i32_0 = arith.constant 0 : i32
    %c0_i32_1 = arith.constant 0 : i32
    return %c0_i32, %c0_i32_0 : i32, i32
  }
  func.func @transform_2(%arg0: i32) -> (i32, i32) {
    %c0_i32 = arith.constant 0 : i32
    %c0_i32_0 = arith.constant 0 : i32
    %c0_i32_1 = arith.constant 0 : i32
    return %c0_i32, %c0_i32_0 : i32, i32
  }
  func.func @transform_3(%arg0: i32) -> (i32, i32) {
    %c0_i32 = arith.constant 0 : i32
    %c0_i32_0 = arith.constant 0 : i32
    %c0_i32_1 = arith.constant 0 : i32
    return %c0_i32, %c0_i32_0 : i32, i32
  }
  func.func @transform_4(%arg0: i32) -> (i32, i32) {
    %c0_i32 = arith.constant 0 : i32
    %c0_i32_0 = arith.constant 0 : i32
    %c0_i32_1 = arith.constant 0 : i32
    return %c0_i32, %c0_i32_0 : i32, i32
  }
  func.func @transform_5(%arg0: i32) -> (i32, i32) {
    %c0_i32 = arith.constant 0 : i32
    %c0_i32_0 = arith.constant 0 : i32
    return %c0_i32, %arg0 : i32, i32
  }
}

</mosaic_0001>

<bundles_post_ra>
// kernel: tpu_custom_call.1
= control target key start
LH: loop header
LB: loop body
LE: loop exit
PB: predicated region body
PF: predicated region fallthrough
CT: control target
= control target key end

     0   :  { %10 = vsyncpa [#allocation3], 0  ;;  %s1936_s0 = inlined_call_operand.hbm [shape: f32[8,512], index: 0, kind: input, shape index: {}]   ;;  %s1937_s1 = inlined_call_operand.hbm [shape: f32[10,512], index: 1, kind: input, shape index: {}]   ;;  %s1938_s2 = inlined_call_operand.hbm [shape: f32[8,200], index: 2, kind: input, shape index: {}]   ;;  %s1939_s3 = inlined_call_operand.vmem [shape: f32[4,132], index: 3, kind: input, shape index: {}]   ;;  %s1940_s4 = inlined_call_operand.vmem [shape: f32[8,4], index: 4, kind: input, shape index: {}]   ;;  %s1941_s5 = inlined_call_operand.hbm [shape: f32[4,512], index: 5, kind: output, shape index: {}]  }
   0x1   :  { %11 = vsyncpa [#allocation6], 0 }
   0x2   :  { %12 = vsyncpa [#allocation4], 0  ;;  %s1506_s18 = smov [#allocation5]  }
   0x3   :  { %s28_s19 = sshll.u32 %s1506_s18, 4  ;;  %s29_s19 = int_to_ptr.vmem [resolvable:$true] %s28_s19 }
   0x4   :  { %s1428_s20 = scalar_lea.vmem %s29_s19, 1024  ;;  %p1433_p1 = scmp.lt.s32.totalorder %s29_s19, %s29_s19 }
   0x5   :  { %p1429_p0 = scmp.ne.s32.totalorder %s29_s19, %s1428_s20  ;;  %p1434_p2 = scmp.lt.s32.totalorder %s1428_s20, %s1428_s20 }
   0x7   :  { %p1435_p3 = por %p1434_p2, %p1433_p1 }
   0x9   :  { %p1436_p4 = pnand %p1435_p3, %p1429_p0 }
   0xb   :  { %1439 = shalt.err (!%p1436_p4)
}
   0xc   :  { %s1507_s21 = smov 512   ;;  %s1508_s22 = smov 32  }
   0xd   :  { %34 = dma.hbm_to_vmem [thread:$0]  %s1937_s1, 1024, %s29_s19, [#allocation6], %s1507_s21, %s1507_s21, %s1508_s22  }
   0xe   :  { %s1509_s25 = smov [#allocation2]   ;;  %s1510_s27 = smov [#allocation7]  }
   0xf   :  { %s19_s26 = sshll.u32 %s1509_s25, 4  ;;  %s41_s28 = sshll.u32 %s1510_s27, 4  ;;  %s20_s26 = int_to_ptr.vmem [resolvable:$true] %s19_s26  ;;  %s42_s28 = int_to_ptr.vmem [resolvable:$true] %s41_s28 }
  0x10   :  { %s1448_s29 = scalar_lea.vmem %s20_s26, 512  ;;  %p1453_p6 = scmp.lt.s32.totalorder %s20_s26, %s20_s26 }
  0x11   :  { %p1449_p5 = scmp.ne.s32.totalorder %s20_s26, %s1448_s29  ;;  %p1454_p7 = scmp.lt.s32.totalorder %s1448_s29, %s1448_s29 }
  0x13   :  { %p1455_p8 = por %p1454_p7, %p1453_p6 }
  0x15   :  { %p1456_p9 = pnand %p1455_p8, %p1449_p5 }
  0x17   :  { %1459 = shalt.err (!%p1456_p9)
}
  0x18   :  { %22 = dma.hbm_to_vmem [thread:$0]  %s1936_s0, 512, %s20_s26, [#allocation3]  }
  0x19   :  { %s1468_s7 = scalar_lea.vmem %s42_s28, 256  ;;  %p1473_p11 = scmp.lt.s32.totalorder %s42_s28, %s42_s28 }
  0x1a   :  { %p1469_p10 = scmp.ne.s32.totalorder %s42_s28, %s1468_s7  ;;  %p1474_p12 = scmp.lt.s32.totalorder %s1468_s7, %s1468_s7 }
  0x1c   :  { %p1475_p13 = por %p1474_p12, %p1473_p11 }
  0x1e   :  { %p1476_p0 = pnand %p1475_p13, %p1469_p10 }
  0x20   :  { %1479 = shalt.err (!%p1476_p0)
}
  0x21   :  { %44 = dma.hbm_to_vmem [thread:$0]  %s1938_s2, 256, %s42_s28, [#allocation6]  }
  0x22   :  { %1500 = dma.done.wait [#allocation3], 512  }
  0x23   :  { %1501 = vsyncadd [#allocation3], 4294966784 }
  0x24   :  { %1502 = dma.done.wait [#allocation6], 1280  }
  0x25   :  { %1503 = vsyncadd [#allocation6], 4294966016  ;;  %v1570_v0 = vld [vmem:[#allocation2 + $0x10] sm:$0xff]  ;;  %v1572_v1 = vld [vmem:[#allocation2] sm:$0xff]  ;;  %s1511_s0 = smov 94   ;;  %s1512_s2 = smov 98   ;;  %v84_v7 = vlaneseq }
  0x26   :  { %277 = vrot.lane.b32.xlu1 %v1570_v0, %s1511_s0  ;;  %273 = vrot.lane.b32.xlu0 %v1572_v1, %s1511_s0  ;;  %v1576_v2 = vld [vmem:[#allocation2 + $0x18] sm:$0xff]  ;;  %v1578_v3 = vld [vmem:[#allocation2 + $0x8] sm:$0xff]  ;;  %s1513_s9 = smov 96   ;;  %s1514_s10 = smov 126   ;;  %v1518_v4 = vmov 0.0   ;;  %v1519_v5 = vmov 0  }
  0x27   :  { %s1515_s11 = smov 30   ;;  %s1516_s12 = smov 2   ;;  %367 = vmatprep.mubr.f32.mxu0 %v1518_v4  ;;  %438 = vmatprep.mubr.f32.mxu1 %v1518_v4  ;;  %v1619_v6 = vld [vmem:[%s1940_s4] sm:$0xff]  ;;  %v1622_v8 = vshrl.u32 %v84_v7, 7  ;;  %v1624_v9 = vand.u32 127, %v84_v7  ;;  %v1627_v11 = vld [vmem:[#allocation5 + $0x10] sm:$0xff] }
  0x28   :  { %s1517_s13 = smov 34   ;;  %1415 = vset.pattern.permute.xlu0 %v1519_v5  ;;  %v1629_v12 = vld [vmem:[#allocation5] sm:$0xff]  ;;  %v1631_v13 = vld [vmem:[#allocation5 + $0x8] sm:$0xff]  ;;  %v1633_v14 = vld [vmem:[#allocation5 + $0x18] sm:$0xff]  ;;  %vm299_vm8 = vcmask 588800   ;;  %s1520_s16 = smov 60  }
  0x29   :  { %v234_v10 = vsub.s32 1, %v1622_v8  ;;  %v167_v17 = vsub.s32 3, %v1622_v8  ;;  %vm281_vm0 = vcmp.lt.s32.totalorder %v1624_v9, 94  ;;  %vm227_vm1 = vcmp.lt.s32.totalorder %v1624_v9, 98  ;;  %s1521_s17 = smov 68   ;;  %s1522_s18 = smov 64  }
  0x2a   :  { %279 = vrot.lane.b32.xlu1 %v1576_v2, %s1511_s0  ;;  %275 = vrot.lane.b32.xlu0 %v1578_v3, %s1511_s0  ;;  %v113_v44 = vsub.s32 2, %v1622_v8  ;;  %vm264_vm2 = vcmp.lt.s32.totalorder %v1624_v9, 96  ;;  %vm210_vm3 = vcmp.lt.s32.totalorder %v1624_v9, 126  ;;  %vm156_vm4 = vcmp.lt.s32.totalorder %v1624_v9, 30  ;;  %s1523_s19 = smov 124   ;;  %s1524_s20 = smov 4  }
  0x2b   :  { %v243_v18 = vrot.slane %v1627_v11, %v234_v10  ;;  %v235_v19 = vrot.slane %v1629_v12, %v234_v10  ;;  %v239_v20 = vrot.slane %v1631_v13, %v234_v10  ;;  %v247_v21 = vrot.slane %v1633_v14, %v234_v10 }
  0x2c   :  { %v1642_v24 = vrot.slane %v1631_v13, %v167_v17  ;;  %v1645_v25 = vrot.slane %v1633_v14, %v167_v17  ;;  %v1648_v26 = vrot.slane %v1629_v12, %v167_v17  ;;  %v1651_v27 = vrot.slane %v1627_v11, %v167_v17 }
  0x2d   :  { %v1661_v51 = vrot.slane %v1631_v13, %v113_v44  ;;  %v1664_v52 = vrot.slane %v1633_v14, %v113_v44  ;;  %v1667_v53 = vrot.slane %v1629_v12, %v113_v44  ;;  %v1670_v54 = vrot.slane %v1627_v11, %v113_v44 }
  0x2e   :  { %221 = vrot.lane.b32.xlu1 %v1578_v3, %s1512_s2  ;;  %219 = vrot.lane.b32.xlu0 %v1572_v1, %s1512_s2  ;;  %vm193_vm5 = vcmp.lt.s32.totalorder %v1624_v9, 2  ;;  %vm86_vm6 = vcmp.lt.s32.totalorder %v1624_v9, 34  ;;  %vm139_vm7 = vcmp.lt.s32.totalorder %v1624_v9, 32  ;;  %vm535_vm13 = vcmp.lt.s32.totalorder %v1624_v9, 60 }
  0x2f   :  { %vm465_vm14 = vcmp.lt.s32.totalorder %v1624_v9, 68  ;;  %vm518_vm15 = vcmp.lt.s32.totalorder %v1624_v9, 64 }
  0x32   :  { %225 = vrot.lane.b32.xlu1 %v1576_v2, %s1512_s2  ;;  %223 = vrot.lane.b32.xlu0 %v1570_v0, %s1512_s2 }
  0x36   :  { %258 = vrot.lane.b32.xlu1 %v1578_v3, %s1513_s9  ;;  %256 = vrot.lane.b32.xlu0 %v1572_v1, %s1513_s9 }
  0x3a   :  { %262 = vrot.lane.b32.xlu1 %v1576_v2, %s1513_s9  ;;  %260 = vrot.lane.b32.xlu0 %v1570_v0, %s1513_s9 }
  0x3e   :  { %204 = vrot.lane.b32.xlu1 %v1578_v3, %s1514_s10  ;;  %202 = vrot.lane.b32.xlu0 %v1572_v1, %s1514_s10 }
  0x42   :  { %208 = vrot.lane.b32.xlu1 %v1576_v2, %s1514_s10  ;;  %206 = vrot.lane.b32.xlu0 %v1570_v0, %s1514_s10 }
  0x46   :  { %150 = vrot.lane.b32.xlu1 %v1578_v3, %s1515_s11  ;;  %148 = vrot.lane.b32.xlu0 %v1572_v1, %s1515_s11 }
  0x4a   :  { %154 = vrot.lane.b32.xlu1 %v1576_v2, %s1515_s11  ;;  %152 = vrot.lane.b32.xlu0 %v1570_v0, %s1515_s11 }
  0x4e   :  { %187 = vrot.lane.b32.xlu1 %v1578_v3, %s1516_s12  ;;  %185 = vrot.lane.b32.xlu0 %v1572_v1, %s1516_s12 }
  0x52   :  { %191 = vrot.lane.b32.xlu1 %v1576_v2, %s1516_s12  ;;  %189 = vrot.lane.b32.xlu0 %v1570_v0, %s1516_s12 }
  0x56   :  { %78 = vrot.lane.b32.xlu1 %v1578_v3, %s1517_s13  ;;  %76 = vrot.lane.b32.xlu0 %v1572_v1, %s1517_s13 }
  0x5a   :  { %82 = vrot.lane.b32.xlu1 %v1576_v2, %s1517_s13  ;;  %80 = vrot.lane.b32.xlu0 %v1570_v0, %s1517_s13 }
  0x5e   :  { %133 = vrot.lane.b32.xlu1 %v1578_v3, %s1508_s22  ;;  %131 = vrot.lane.b32.xlu0 %v1572_v1, %s1508_s22 }
  0x62   :  { %137 = vrot.lane.b32.xlu1 %v1576_v2, %s1508_s22  ;;  %135 = vrot.lane.b32.xlu0 %v1570_v0, %s1508_s22 }
  0x66   :  { %296 = vperm.xlu0 %1415, %v1619_v6  }
  0x98   :  { %v278_v15 = vpop.permute.xlu1 %277  ;;  %v274_v16 = vpop.permute.xlu0 %273 }
  0x9c   :  { %v280_v22 = vpop.permute.xlu1 %279  ;;  %v276_v23 = vpop.permute.xlu0 %275 }
  0x9d   :  { %v282_v28 = vsel %vm281_vm0, %v278_v15, %v280_v22  ;;  %v285_v29 = vsel %vm281_vm0, %v280_v22, %v274_v16  ;;  %v283_v30 = vsel %vm281_vm0, %v276_v23, %v278_v15  ;;  %v284_v31 = vsel %vm281_vm0, %v274_v16, %v276_v23 }
  0x9e   :  { %v288_v32 = vmul.f32 %v282_v28, %v243_v18  ;;  %v286_v33 = vmul.f32 %v284_v31, %v235_v19  ;;  %v287_v34 = vmul.f32 %v283_v30, %v239_v20  ;;  %v289_v35 = vmul.f32 %v285_v29, %v247_v21 }
  0x9f   :  { %vm589_vm0 = vcmp.lt.s32.totalorder %v1624_v9, 124 }
  0xa0   :  { %v222_v36 = vpop.permute.xlu1 %221  ;;  %v220_v37 = vpop.permute.xlu0 %219  ;;  %v291_v38 = vmul.f32 %v287_v34, %v1642_v24  ;;  %v293_v39 = vmul.f32 %v289_v35, %v1645_v25  ;;  %v290_v40 = vmul.f32 %v286_v33, %v1648_v26  ;;  %v292_v41 = vmul.f32 %v288_v32, %v1651_v27 }
  0xa1   :  { %v230_v47 = vsel %vm227_vm1, %v220_v37, %v222_v36 }
  0xa2   :  { %317 = vmatprep.subr.mxu0 %v291_v38  ;;  %388 = vmatprep.subr.mxu1 %v293_v39  ;;  %v248_v55 = vmul.f32 %v235_v19, %v230_v47  ;;  %v93_v39 = vsub.s32 0, %v1622_v8 }
  0xa3   :  { %318 = vmatpush1.msra.mxu0 %v290_v40  ;;  %389 = vmatpush1.msra.mxu1 %v292_v41 }
  0xa4   :  { %v226_v42 = vpop.permute.xlu1 %225  ;;  %v224_v43 = vpop.permute.xlu0 %223  ;;  %v252_v29 = vmul.f32 %v248_v55, %v1667_v53  ;;  %v94_v44 = vrot.slane %v1629_v12, %v93_v39 }
  0xa5   :  { %v231_v48 = vsel %vm227_vm1, %v226_v42, %v220_v37  ;;  %v229_v49 = vsel %vm227_vm1, %v222_v36, %v224_v43  ;;  %v228_v50 = vsel %vm227_vm1, %v224_v43, %v226_v42  ;;  %v98_v42 = vrot.slane %v1631_v13, %v93_v39 }
  0xa6   :  { %v251_v56 = vmul.f32 %v247_v21, %v231_v48  ;;  %v249_v57 = vmul.f32 %v239_v20, %v229_v49  ;;  %v250_v61 = vmul.f32 %v243_v18, %v228_v50  ;;  %vm572_vm1 = vcmp.lt.s32.totalorder %v1624_v9, 4 }
  0xa8   :  { %v259_v45 = vpop.permute.xlu1 %258  ;;  %v257_v46 = vpop.permute.xlu0 %256  ;;  %v253_v23 = vmul.f32 %v249_v57, %v1661_v51  ;;  %v255_v28 = vmul.f32 %v251_v56, %v1664_v52  ;;  %v254_v30 = vmul.f32 %v250_v61, %v1670_v54 }
  0xa9   :  { %v267_v58 = vsel %vm264_vm2, %v257_v46, %v259_v45 }
  0xaa   :  { %v269_v16 = vmul.f32 %v267_v58, %v235_v19 }
  0xac   :  { %v263_v59 = vpop.permute.xlu1 %262  ;;  %v261_v60 = vpop.permute.xlu0 %260 }
  0xad   :  { %v268_v62 = vsel %vm264_vm2, %v263_v59, %v257_v46  ;;  %v265_v63 = vsel %vm264_vm2, %v261_v60, %v263_v59  ;;  %v266_v5 = vsel %vm264_vm2, %v259_v45, %v261_v60 }
  0xae   :  { %v272_v7 = vmul.f32 %v268_v62, %v247_v21  ;;  %v270_v10 = vmul.f32 %v266_v5, %v239_v20  ;;  %v271_v15 = vmul.f32 %v265_v63, %v243_v18 }
  0xb0   :  { %v205_v17 = vpop.permute.xlu1 %204  ;;  %v203_v22 = vpop.permute.xlu0 %202  ;;  %319 = vmatprep.subr.mxu0 %v270_v10  ;;  %390 = vmatprep.subr.mxu1 %v272_v7 }
  0xb1   :  { %320 = vmatpush1.msra.mxu0 %v269_v16  ;;  %391 = vmatpush1.msra.mxu1 %v271_v15  ;;  %v213_v18 = vsel %vm210_vm3, %v203_v22, %v205_v17 }
  0xb2   :  { %321 = vmatprep.subr.mxu0 %v253_v23  ;;  %392 = vmatprep.subr.mxu1 %v255_v28  ;;  %v215_v36 = vmul.f32 %v213_v18, %v1648_v26 }
  0xb3   :  { %322 = vmatpush1.msra.mxu0 %v252_v29  ;;  %393 = vmatpush1.msra.mxu1 %v254_v30 }
  0xb4   :  { %v209_v19 = vpop.permute.xlu1 %208  ;;  %v207_v20 = vpop.permute.xlu0 %206 }
  0xb5   :  { %v214_v21 = vsel %vm210_vm3, %v209_v19, %v203_v22  ;;  %v211_v31 = vsel %vm210_vm3, %v207_v20, %v209_v19  ;;  %v212_v32 = vsel %vm210_vm3, %v205_v17, %v207_v20 }
  0xb6   :  { %v218_v33 = vmul.f32 %v214_v21, %v1645_v25  ;;  %v216_v34 = vmul.f32 %v212_v32, %v1642_v24  ;;  %v217_v35 = vmul.f32 %v211_v31, %v1651_v27 }
  0xb8   :  { %v151_v37 = vpop.permute.xlu1 %150  ;;  %v149_v38 = vpop.permute.xlu0 %148  ;;  %323 = vmatprep.subr.mxu0 %v216_v34  ;;  %394 = vmatprep.subr.mxu1 %v218_v33 }
  0xb9   :  { %324 = vmatpush1.msra.mxu0 %v215_v36  ;;  %395 = vmatpush1.msra.mxu1 %v217_v35  ;;  %v159_v43 = vsel %vm156_vm4, %v149_v38, %v151_v37 }
  0xba   :  { %325 = vmatprep.subr.mxu0 %v1578_v3  ;;  %396 = vmatprep.subr.mxu1 %v1576_v2  ;;  %v106_v3 = vrot.slane %v1633_v14, %v93_v39  ;;  %v162_v50 = vmul.f32 %v159_v43, %v98_v42 }
  0xbb   :  { %326 = vmatpush1.msra.mxu0 %v1572_v1  ;;  %397 = vmatpush1.msra.mxu1 %v1570_v0  ;;  %v102_v1 = vrot.slane %v1627_v11, %v93_v39 }
  0xbc   :  { %v155_v40 = vpop.permute.xlu1 %154  ;;  %v153_v41 = vpop.permute.xlu0 %152  ;;  %v182_v10 = vmul.f32 %v1642_v24, %v162_v50 }
  0xbd   :  { %v160_v46 = vsel %vm156_vm4, %v155_v40, %v149_v38  ;;  %v157_v47 = vsel %vm156_vm4, %v153_v41, %v155_v40  ;;  %v158_v48 = vsel %vm156_vm4, %v151_v37, %v153_v41 }
  0xbe   :  { %v161_v55 = vmul.f32 %v160_v46, %v94_v44  ;;  %v164_v56 = vmul.f32 %v157_v47, %v106_v3  ;;  %v163_v59 = vmul.f32 %v158_v48, %v102_v1 }
  0xc0   :  { %v188_v2 = vpop.permute.xlu1 %187  ;;  %v186_v45 = vpop.permute.xlu0 %185  ;;  %v181_v17 = vmul.f32 %v1648_v26, %v161_v55  ;;  %v184_v22 = vmul.f32 %v1645_v25, %v164_v56  ;;  %v183_v23 = vmul.f32 %v1651_v27, %v163_v59 }
  0xc1   :  { %v196_v0 = vsel %vm193_vm5, %v186_v45, %v188_v2 }
  0xc2   :  { %v199_v49 = vmul.f32 %v196_v0, %v1661_v51 }
  0xc4   :  { %v192_v57 = vpop.permute.xlu1 %191  ;;  %v190_v58 = vpop.permute.xlu0 %189  ;;  %327 = vmatprep.subr.mxu0 %v199_v49 }
  0xc5   :  { %v197_v60 = vsel %vm193_vm5, %v192_v57, %v186_v45  ;;  %v194_v61 = vsel %vm193_vm5, %v190_v58, %v192_v57  ;;  %v195_v62 = vsel %vm193_vm5, %v188_v2, %v190_v58  ;;  %v72_v45 = vld [vmem:[#allocation7] sm:$0xff] }
  0xc6   :  { %v198_v63 = vmul.f32 %v197_v60, %v1667_v53  ;;  %v200_v5 = vmul.f32 %v195_v62, %v1670_v54  ;;  %v201_v7 = vmul.f32 %v194_v61, %v1664_v52  ;;  %v1525_v60 = vmov 1  }
  0xc7   :  { %1416 = vset.pattern.permute.xlu0 %v1525_v60  ;;  %v600_v61 = vsub.s32 5, %v1622_v8 }
  0xc8   :  { %v79_v15 = vpop.permute.xlu1 %78  ;;  %v77_v16 = vpop.permute.xlu0 %76  ;;  %328 = vmatpush1.msra.mxu0 %v198_v63  ;;  %398 = vmatprep.subr.mxu1 %v201_v7  ;;  %v546_v63 = vsub.s32 7, %v1622_v8 }
  0xc9   :  { %329 = vmatprep.subr.mxu0 %v182_v10  ;;  %399 = vmatpush1.msra.mxu1 %v200_v5  ;;  %v89_v24 = vsel %vm86_vm6, %v77_v16, %v79_v15  ;;  %v601_v7 = vrot.slane %v1629_v12, %v600_v61  ;;  %v605_v10 = vrot.slane %v1631_v13, %v600_v61 }
  0xca   :  { %330 = vmatpush1.msra.mxu0 %v181_v17  ;;  %400 = vmatprep.subr.mxu1 %v184_v22  ;;  %v108_v27 = vmul.f32 %v98_v42, %v89_v24  ;;  %v1764_v17 = vrot.slane %v1631_v13, %v546_v63  ;;  %v609_v24 = vrot.slane %v1627_v11, %v600_v61 }
  0xcb   :  { %401 = vmatpush1.msra.mxu1 %v183_v23 }
  0xcc   :  { %v83_v28 = vpop.permute.xlu1 %82  ;;  %v81_v29 = vpop.permute.xlu0 %80 }
  0xcd   :  { %v90_v19 = vsel %vm86_vm6, %v83_v28, %v77_v16  ;;  %v87_v26 = vsel %vm86_vm6, %v81_v29, %v83_v28  ;;  %v88_v20 = vsel %vm86_vm6, %v79_v15, %v81_v29  ;;  %v1761_v15 = vrot.slane %v1629_v12, %v546_v63 }
  0xce   :  { %v107_v31 = vmul.f32 %v94_v44, %v90_v19  ;;  %v110_v32 = vmul.f32 %v106_v3, %v87_v26  ;;  %v109_v35 = vmul.f32 %v102_v1, %v88_v20  ;;  %vm800_vm6 = vcmask 64512  }
  0xd0   :  { %v134_v30 = vpop.permute.xlu1 %133  ;;  %v132_v18 = vpop.permute.xlu0 %131  ;;  %v127_v43 = vmul.f32 %v1667_v53, %v107_v31  ;;  %v130_v2 = vmul.f32 %v1664_v52, %v110_v32  ;;  %v129_v46 = vmul.f32 %v1670_v54, %v109_v35  ;;  %v1792_v31 = vrot.slane %v1627_v11, %v546_v63 }
  0xd1   :  { %v142_v25 = vsel %vm139_vm7, %v132_v18, %v134_v30 }
  0xd2   :  { %v145_v21 = vmul.f32 %v142_v25, %v98_v42  ;;  %v128_v42 = vmul.f32 %v1661_v51, %v108_v27  ;;  %v1781_v25 = vrot.slane %v1633_v14, %v546_v63 }
  0xd4   :  { %v138_v33 = vpop.permute.xlu1 %137  ;;  %v136_v34 = vpop.permute.xlu0 %135  ;;  %331 = vmatprep.subr.mxu0 %v145_v21 }
  0xd5   :  { %v143_v36 = vsel %vm139_vm7, %v138_v33, %v132_v18  ;;  %v140_v37 = vsel %vm139_vm7, %v136_v34, %v138_v33  ;;  %v141_v38 = vsel %vm139_vm7, %v134_v30, %v136_v34  ;;  %v613_v30 = vrot.slane %v1633_v14, %v600_v61 }
  0xd6   :  { %v144_v39 = vmul.f32 %v143_v36, %v94_v44  ;;  %v146_v40 = vmul.f32 %v141_v38, %v102_v1  ;;  %v147_v41 = vmul.f32 %v140_v37, %v106_v3  ;;  %v492_v38 = vsub.s32 6, %v1622_v8 }
  0xd8   :  { %332 = vmatpush1.msra.mxu0 %v144_v39  ;;  %402 = vmatprep.subr.mxu1 %v147_v41 }
  0xd9   :  { %333 = vmatprep.subr.mxu0 %v128_v42  ;;  %403 = vmatpush1.msra.mxu1 %v146_v40 }
  0xda   :  { %334 = vmatpush1.msra.mxu0 %v127_v43  ;;  %404 = vmatprep.subr.mxu1 %v130_v2  ;;  %v1810_v43 = vrot.slane %v1629_v12, %v492_v38 }
  0xdb   :  { %1370 = vmatmul.mubr.msk.f32.vlgmr.msra.gmra.mxu0 %vm299_vm8, %v72_v45  ;;  %405 = vmatpush1.msra.mxu1 %v129_v46  ;;  %v1814_v46 = vrot.slane %v1631_v13, %v492_v38 }
  0xdc   :  { %1371 = vmatmul.mubr.msk.f32.vlgmr.msra.gmra.mxu1 %vm299_vm8, %v72_v45  ;;  %705 = vmatprep.mubr.f32.mxu0 %v1518_v4 }
  0xdd   :  { %776 = vmatprep.mubr.f32.mxu1 %v1518_v4 }
  0xe1   :  { %v297_v51 = vpop.permute.xlu0 %296 }
 0x19b   :  { %v369_v53 = vpop.f32.mrf.mxu0 }
 0x19c   :  { %v370_v52 = vadd.f32 %v369_v53, %v297_v51  ;;  %v440_v44 = vpop.f32.mrf.mxu1 }
 0x19d   :  { %v441_v3 = vadd.f32 %v440_v44, %v297_v51  ;;  %v371_v1 = vpop.f32.mrf.mxu0 }
 0x19e   :  { %vm445_vm9 = vcmp.ge.f32.partialorder %v370_v52, 0.0  ;;  %v449_v47 = vmul.f32 0.1, %v370_v52  ;;  %v372_v54 = vadd.f32 %v371_v1, %v297_v51  ;;  %v442_v0 = vpop.f32.mrf.mxu1 }
 0x19f   :  { %vm447_vm10 = vcmp.ge.f32.partialorder %v441_v3, 0.0  ;;  %v451_v48 = vmul.f32 0.1, %v441_v3  ;;  %v443_v55 = vadd.f32 %v442_v0, %v297_v51 }
 0x1a0   :  { %v1726_v49 = vsel %vm445_vm9, %v370_v52, %v449_v47  ;;  %v450_v50 = vmul.f32 0.1, %v372_v54  ;;  %vm446_vm11 = vcmp.ge.f32.partialorder %v372_v54, 0.0 }
 0x1a1   :  { %v1728_v56 = vsel %vm447_vm10, %v441_v3, %v451_v48  ;;  %527 = vrot.lane.b32.xlu1 %v1726_v49, %s1520_s16  ;;  %v452_v58 = vmul.f32 0.1, %v443_v55  ;;  %vm448_vm12 = vcmp.ge.f32.partialorder %v443_v55, 0.0 }
 0x1a2   :  { %531 = vrot.lane.b32.xlu0 %v1728_v56, %s1520_s16  ;;  %v1732_v57 = vsel %vm446_vm11, %v372_v54, %v450_v50  ;;  %vm1527_vm11 = vmmov 0  }
 0x1a3   :  { %v1736_v59 = vsel %vm448_vm12, %v443_v55, %v452_v58  ;;  %v1838_v55 = vrot.slane %v1633_v14, %v492_v38  ;;  %vm1107_vm12 = vcmask 1043456  }
 0x1a5   :  { %529 = vrot.lane.b32.xlu1 %v1732_v57, %s1520_s16 }
 0x1a6   :  { %457 = vrot.lane.b32.xlu0 %v1726_v49, %s1521_s17 }
 0x1a9   :  { %533 = vrot.lane.b32.xlu1 %v1736_v59, %s1520_s16 }
 0x1aa   :  { %461 = vrot.lane.b32.xlu0 %v1728_v56, %s1521_s17 }
 0x1ad   :  { %459 = vrot.lane.b32.xlu1 %v1732_v57, %s1521_s17 }
 0x1ae   :  { %510 = vrot.lane.b32.xlu0 %v1726_v49, %s1522_s18 }
 0x1b1   :  { %463 = vrot.lane.b32.xlu1 %v1736_v59, %s1521_s17 }
 0x1b2   :  { %514 = vrot.lane.b32.xlu0 %v1728_v56, %s1522_s18 }
 0x1b5   :  { %512 = vrot.lane.b32.xlu1 %v1732_v57, %s1522_s18 }
 0x1b6   :  { %581 = vrot.lane.b32.xlu0 %v1726_v49, %s1523_s19 }
 0x1b9   :  { %516 = vrot.lane.b32.xlu1 %v1736_v59, %s1522_s18 }
 0x1ba   :  { %585 = vrot.lane.b32.xlu0 %v1728_v56, %s1523_s19 }
 0x1bd   :  { %583 = vrot.lane.b32.xlu1 %v1732_v57, %s1523_s19 }
 0x1be   :  { %564 = vrot.lane.b32.xlu0 %v1726_v49, %s1524_s20 }
 0x1c1   :  { %587 = vrot.lane.b32.xlu1 %v1736_v59, %s1523_s19 }
 0x1c2   :  { %568 = vrot.lane.b32.xlu0 %v1728_v56, %s1524_s20 }
 0x1c5   :  { %566 = vrot.lane.b32.xlu1 %v1732_v57, %s1524_s20 }
 0x1c6   :  { %635 = vperm.xlu0 %1416, %v1619_v6  }
 0x1c9   :  { %570 = vrot.lane.b32.xlu1 %v1736_v59, %s1524_s20 }
 0x213   :  { %v528_v62 = vpop.permute.xlu1 %527 }
 0x214   :  { %v532_v5 = vpop.permute.xlu0 %531 }
 0x217   :  { %v530_v16 = vpop.permute.xlu1 %529 }
 0x218   :  { %v1768_v6 = vsel %vm535_vm13, %v530_v16, %v532_v5  ;;  %v1772_v22 = vsel %vm535_vm13, %v528_v62, %v530_v16  ;;  %v458_v23 = vpop.permute.xlu0 %457 }
 0x219   :  { %v626_v28 = vmul.f32 %v601_v7, %v1772_v22  ;;  %v627_v29 = vmul.f32 %v605_v10, %v1768_v6 }
 0x21b   :  { %v630_v18 = vmul.f32 %v626_v28, %v1761_v15  ;;  %v534_v19 = vpop.permute.xlu1 %533  ;;  %v631_v26 = vmul.f32 %v627_v29, %v1764_v17 }
 0x21c   :  { %v1785_v20 = vsel %vm535_vm13, %v532_v5, %v534_v19  ;;  %v1789_v21 = vsel %vm535_vm13, %v534_v19, %v528_v62  ;;  %v462_v27 = vpop.permute.xlu0 %461  ;;  %v472_v19 = vsub.s32 4, %v1622_v8  ;;  %vm1103_vm13 = vcmask 31744  }
 0x21d   :  { %v628_v32 = vmul.f32 %v609_v24, %v1785_v20  ;;  %v629_v33 = vmul.f32 %v613_v30, %v1789_v21  ;;  %655 = vmatprep.subr.mxu0 %v631_v26 }
 0x21e   :  { %656 = vmatpush1.msra.mxu0 %v630_v18  ;;  %v477_v8 = vrot.slane %v1631_v13, %v472_v19 }
 0x21f   :  { %v632_v34 = vmul.f32 %v628_v32, %v1792_v31  ;;  %v460_v35 = vpop.permute.xlu1 %459  ;;  %v633_v36 = vmul.f32 %v629_v33, %v1781_v25 }
 0x220   :  { %v511_v37 = vpop.permute.xlu0 %510  ;;  %v1802_v40 = vsel %vm465_vm14, %v460_v35, %v462_v27  ;;  %v1806_v42 = vsel %vm465_vm14, %v458_v23, %v460_v35  ;;  %v541_v13 = vmul.f32 %v1772_v22, %v477_v8 }
 0x221   :  { %726 = vmatprep.subr.mxu1 %v633_v36  ;;  %v615_v2 = vmul.f32 %v605_v10, %v1802_v40  ;;  %v614_v51 = vmul.f32 %v601_v7, %v1806_v42  ;;  %v473_v36 = vrot.slane %v1629_v12, %v472_v19 }
 0x222   :  { %727 = vmatpush1.msra.mxu1 %v632_v34 }
 0x223   :  { %v464_v39 = vpop.permute.xlu1 %463  ;;  %v619_v50 = vmul.f32 %v615_v2, %v1814_v46  ;;  %v618_v58 = vmul.f32 %v614_v51, %v1810_v43  ;;  %v540_v12 = vmul.f32 %v1789_v21, %v473_v36 }
 0x224   :  { %v515_v41 = vpop.permute.xlu0 %514  ;;  %v1819_v53 = vsel %vm465_vm14, %v464_v39, %v458_v23  ;;  %v1831_v1 = vsel %vm465_vm14, %v462_v27, %v464_v39  ;;  %v481_v39 = vrot.slane %v1627_v11, %v472_v19  ;;  %vm1185_vm14 = vcmask 1041408  }
 0x225   :  { %v617_v0 = vmul.f32 %v613_v30, %v1819_v53  ;;  %v616_v60 = vmul.f32 %v609_v24, %v1831_v1 }
 0x227   :  { %v513_v45 = vpop.permute.xlu1 %512  ;;  %v621_v23 = vmul.f32 %v617_v0, %v1838_v55 }
 0x228   :  { %v1823_v52 = vsel %vm518_vm15, %v513_v45, %v515_v41  ;;  %v1827_v44 = vsel %vm518_vm15, %v511_v37, %v513_v45  ;;  %v582_v3 = vpop.permute.xlu0 %581  ;;  %v542_v45 = vmul.f32 %v1768_v6, %v481_v39  ;;  %v486_v6 = vmul.f32 %v473_v36, %v1819_v53 }
 0x229   :  { %v622_v47 = vmul.f32 %v601_v7, %v1827_v44  ;;  %v623_v54 = vmul.f32 %v605_v10, %v1823_v52  ;;  %v1854_v7 = vrot.slane %v1627_v11, %v492_v38  ;;  %v525_v53 = vmul.f32 %v1823_v52, %v481_v39 }
 0x22a   :  { %v562_v0 = vmul.f32 %v1792_v31, %v542_v45 }
 0x22b   :  { %657 = vmatprep.subr.mxu0 %v623_v54  ;;  %v517_v48 = vpop.permute.xlu1 %516  ;;  %v620_v28 = vmul.f32 %v616_v60, %v1854_v7 }
 0x22c   :  { %v1844_v61 = vsel %vm518_vm15, %v515_v41, %v517_v48  ;;  %v1848_v62 = vsel %vm518_vm15, %v517_v48, %v511_v37  ;;  %658 = vmatpush1.msra.mxu0 %v622_v47  ;;  %v586_v10 = vpop.permute.xlu0 %585  ;;  %v485_v37 = vrot.slane %v1633_v14, %v472_v19  ;;  %v561_v47 = vmul.f32 %v1764_v17, %v541_v13  ;;  %v63_v19 = vld [vmem:[#allocation5 + $0x28] sm:$0x3] }
 0x22d   :  { %v624_v63 = vmul.f32 %v609_v24, %v1844_v61  ;;  %v625_v5 = vmul.f32 %v613_v30, %v1848_v62  ;;  %659 = vmatprep.subr.mxu0 %v619_v50  ;;  %v488_v48 = vmul.f32 %v481_v39, %v1802_v40  ;;  %vm1181_vm15 = vcmask 15360  }
 0x22e   :  { %660 = vmatpush1.msra.mxu0 %v618_v58  ;;  %v543_v14 = vmul.f32 %v1785_v20, %v485_v37  ;;  %v487_v20 = vmul.f32 %v477_v8, %v1806_v42  ;;  %v489_v54 = vmul.f32 %v485_v37, %v1831_v1  ;;  %v523_v42 = vmul.f32 %v1848_v62, %v473_v36 }
 0x22f   :  { %728 = vmatprep.subr.mxu1 %v625_v5  ;;  %v584_v16 = vpop.permute.xlu1 %583  ;;  %v508_v1 = vmul.f32 %v1854_v7, %v488_v48 }
 0x230   :  { %v591_v29 = vsel %vm589_vm0, %v584_v16, %v586_v10  ;;  %v592_v24 = vsel %vm589_vm0, %v582_v3, %v584_v16  ;;  %729 = vmatpush1.msra.mxu1 %v624_v63  ;;  %v565_v27 = vpop.permute.xlu0 %564  ;;  %v563_v9 = vmul.f32 %v1781_v25, %v543_v14  ;;  %v509_v40 = vmul.f32 %v1838_v55, %v489_v54 }
 0x231   :  { %v594_v30 = vmul.f32 %v592_v24, %v1761_v15  ;;  %v595_v18 = vmul.f32 %v591_v29, %v1764_v17  ;;  %730 = vmatprep.subr.mxu1 %v621_v23  ;;  %v526_v17 = vmul.f32 %v1844_v61, %v485_v37  ;;  %v74_v29 = vld [vmem:[%s1939_s3] sm:$0xf] }
 0x232   :  { %731 = vmatpush1.msra.mxu1 %v620_v28 }
 0x233   :  { %661 = vmatprep.subr.mxu0 %v595_v18  ;;  %v588_v26 = vpop.permute.xlu1 %587 }
 0x234   :  { %v590_v32 = vsel %vm589_vm0, %v586_v10, %v588_v26  ;;  %v593_v33 = vsel %vm589_vm0, %v588_v26, %v582_v3  ;;  %662 = vmatpush1.msra.mxu0 %v594_v30  ;;  %v569_v2 = vpop.permute.xlu0 %568  ;;  %v62_v26 = vld [vmem:[#allocation5 + $0x20] sm:$0x3] }
 0x235   :  { %v596_v34 = vmul.f32 %v590_v32, %v1792_v31  ;;  %v597_v35 = vmul.f32 %v593_v33, %v1781_v25  ;;  %663 = vmatprep.subr.mxu0 %v1732_v57  ;;  %v507_v25 = vmul.f32 %v1814_v46, %v487_v20  ;;  %v506_v31 = vmul.f32 %v1810_v43, %v486_v6  ;;  %v64_v32 = vld [vmem:[#allocation5 + $0x30] sm:$0x3] }
 0x236   :  { %664 = vmatpush1.msra.mxu0 %v1726_v49 }
 0x237   :  { %732 = vmatprep.subr.mxu1 %v597_v35  ;;  %v567_v38 = vpop.permute.xlu1 %566 }
 0x238   :  { %v575_v41 = vsel %vm572_vm1, %v565_v27, %v567_v38  ;;  %733 = vmatpush1.msra.mxu1 %v596_v34  ;;  %v574_v11 = vsel %vm572_vm1, %v567_v38, %v569_v2 }
 0x239   :  { %v578_v57 = vmul.f32 %v575_v41, %v1814_v46  ;;  %734 = vmatprep.subr.mxu1 %v1736_v59  ;;  %v579_v3 = vmul.f32 %v574_v11, %v1854_v7  ;;  %v1526_v46 = vmov 2  }
 0x23a   :  { %735 = vmatpush1.msra.mxu1 %v1728_v56  ;;  %v560_v56 = vmul.f32 %v1761_v15, %v540_v12  ;;  %v524_v15 = vmul.f32 %v1827_v44, %v477_v8  ;;  %v73_v44 = vld [vmem:[#allocation7 + $0x8] sm:$0xff]  ;;  %1417 = vset.pattern.permute.xlu1 %v1526_v46 }
 0x23b   :  { %665 = vmatprep.subr.mxu0 %v578_v57  ;;  %v571_v49 = vpop.permute.xlu1 %570 }
 0x23c   :  { %v573_v51 = vsel %vm572_vm1, %v569_v2, %v571_v49  ;;  %v576_v59 = vsel %vm572_vm1, %v571_v49, %v565_v27  ;;  %v65_v27 = vld [vmem:[#allocation5 + $0x38] sm:$0x3] }
 0x23d   :  { %v577_v22 = vmul.f32 %v576_v59, %v1810_v43  ;;  %v580_v21 = vmul.f32 %v573_v51, %v1838_v55  ;;  %v1919_v43 = vld [vmem:[%s1940_s4] sm:$0xf]  ;;  %v1528_v51 = vmov 3  }
 0x23e   :  { %797 = vperm.xlu1 %1417, %v1919_v43   ;;  %1419 = vset.pattern.permute.xlu0 %v1528_v51 }
 0x23f   :  { %666 = vmatpush1.msra.mxu0 %v577_v22  ;;  %736 = vmatprep.subr.mxu1 %v580_v21 }
 0x240   :  { %667 = vmatprep.subr.mxu0 %v561_v47  ;;  %737 = vmatpush1.msra.mxu1 %v579_v3  ;;  %v75_v47 = vld [vmem:[%s1939_s3 + $0x4] sm:$0xf]  ;;  %s1529_s3 = smov [#allocation8]  }
 0x241   :  { %668 = vmatpush1.msra.mxu0 %v560_v56  ;;  %738 = vmatprep.subr.mxu1 %v563_v9  ;;  %v636_v52 = vpop.permute.xlu0 %635  ;;  %s1360_s26 = sshll.u32 %s1529_s3, 4  ;;  %s1361_s26 = int_to_ptr.vmem [resolvable:$true] %s1360_s26 }
 0x242   :  { %669 = vmatprep.subr.mxu0 %v524_v15  ;;  %739 = vmatpush1.msra.mxu1 %v562_v0  ;;  %s1480_s27 = scalar_lea.vmem %s1361_s26, 256  ;;  %p1485_p2 = scmp.lt.s32.totalorder %s1361_s26, %s1361_s26 }
 0x243   :  { %670 = vmatpush1.msra.mxu0 %v523_v42  ;;  %740 = vmatprep.subr.mxu1 %v526_v17  ;;  %p1481_p1 = scmp.ne.s32.totalorder %s1361_s26, %s1480_s27  ;;  %p1486_p3 = scmp.lt.s32.totalorder %s1480_s27, %s1480_s27 }
 0x244   :  { %671 = vmatprep.subr.mxu0 %v507_v25  ;;  %741 = vmatpush1.msra.mxu1 %v525_v53 }
 0x245   :  { %672 = vmatpush1.msra.mxu0 %v506_v31  ;;  %742 = vmatprep.subr.mxu1 %v509_v40  ;;  %p1487_p4 = por %p1486_p3, %p1485_p2 }
 0x246   :  { %1372 = vmatmul.mubr.msk.f32.vlgmr.msra.gmra.mxu0 %vm299_vm8, %v73_v44  ;;  %743 = vmatpush1.msra.mxu1 %v508_v1 }
 0x247   :  { %1373 = vmatmul.mubr.msk.f32.vlgmr.msra.gmra.mxu1 %vm299_vm8, %v73_v44  ;;  %868 = vmatprep.mubr.f32.mxu0 %v1518_v4  ;;  %p1488_p5 = pnand %p1487_p4, %p1481_p1 }
 0x248   :  { %939 = vmatprep.mubr.f32.mxu1 %v1518_v4  ;;  %1418 = vset.pattern.permute.xlu1 %v1528_v51 }
 0x249   :  { %1100 = vperm.xlu1 %1418, %v1919_v43  }
 0x2b9   :  { %v798_v33 = vpop.permute.xlu1 %797 }
 0x2c4   :  { %v1101_v6 = vpop.permute.xlu1 %1100 }
 0x306   :  { %v707_v50 = vpop.f32.mrf.mxu0 }
 0x307   :  { %v708_v55 = vadd.f32 %v707_v50, %v636_v52  ;;  %v778_v58 = vpop.f32.mrf.mxu1 }
 0x308   :  { %v779_v60 = vadd.f32 %v778_v58, %v636_v52  ;;  %v709_v61 = vpop.f32.mrf.mxu0 }
 0x309   :  { %v710_v62 = vadd.f32 %v709_v61, %v636_v52  ;;  %v780_v63 = vpop.f32.mrf.mxu1  ;;  %v787_v5 = vmul.f32 0.1, %v708_v55  ;;  %vm783_vm2 = vcmp.ge.f32.partialorder %v708_v55, 0.0 }
 0x30a   :  { %v781_v7 = vadd.f32 %v780_v63, %v636_v52  ;;  %v789_v10 = vmul.f32 0.1, %v779_v60  ;;  %vm785_vm4 = vcmp.ge.f32.partialorder %v779_v60, 0.0 }
 0x30b   :  { %v788_v16 = vmul.f32 0.1, %v710_v62  ;;  %vm784_vm3 = vcmp.ge.f32.partialorder %v710_v62, 0.0  ;;  %v791_v24 = vsel %vm783_vm2, %v708_v55, %v787_v5 }
 0x30c   :  { %v790_v23 = vmul.f32 0.1, %v781_v7  ;;  %vm786_vm5 = vcmp.ge.f32.partialorder %v781_v7, 0.0  ;;  %v793_v18 = vsel %vm785_vm4, %v779_v60, %v789_v10 }
 0x30d   :  { %v792_v28 = vsel %vm784_vm3, %v710_v62, %v788_v16 }
 0x30e   :  { %834 = vmatprep.subr.mxu0 %v792_v28  ;;  %v794_v30 = vsel %vm786_vm5, %v781_v7, %v790_v23 }
 0x30f   :  { %835 = vmatpush1.msra.mxu0 %v791_v24  ;;  %905 = vmatprep.subr.mxu1 %v794_v30 }
 0x310   :  { %1374 = vmatmul.mubr.msk.f32.vlgmr.msra.gmra.mxu0 %vm800_vm6, %v74_v29  ;;  %906 = vmatpush1.msra.mxu1 %v793_v18 }
 0x311   :  { %1375 = vmatmul.mubr.msk.f32.vlgmr.msra.gmra.mxu1 %vm800_vm6, %v74_v29  ;;  %988 = vmatprep.subr.mxu0 %v63_v19 }
 0x312   :  { %989 = vmatpush1.xpose.msra.mxu0 %v62_v26  ;;  %1058 = vmatprep.subr.mxu1 %v65_v27 }
 0x313   :  { %1059 = vmatpush1.xpose.msra.mxu1 %v64_v32  ;;  %1386 = vmatprep.subr.mxu0 %v1518_v4 }
 0x314   :  { %1378 = vmatprep.subr.msk.mxu1 %vm1185_vm14, %v63_v19 }
 0x3d0   :  { %v870_v34 = vpop.f32.mrf.mxu0 }
 0x3d1   :  { %v871_v35 = vadd.f32 %v870_v34, %v798_v33  ;;  %v941_v8 = vpop.f32.mrf.mxu1 }
 0x3d2   :  { %v942_v36 = vadd.f32 %v941_v8, %v798_v33  ;;  %v872_v37 = vpop.f32.mrf.mxu0 }
 0x3d3   :  { %v873_v38 = vadd.f32 %v872_v37, %v798_v33  ;;  %v943_v39 = vpop.f32.mrf.mxu1  ;;  %v950_v57 = vmul.f32 0.1, %v871_v35  ;;  %vm946_vm8 = vcmp.ge.f32.partialorder %v871_v35, 0.0 }
 0x3d4   :  { %v944_v41 = vadd.f32 %v943_v39, %v798_v33  ;;  %v952_v13 = vmul.f32 0.1, %v942_v36  ;;  %vm948_vm9 = vcmp.ge.f32.partialorder %v942_v36, 0.0 }
 0x3d5   :  { %v951_v12 = vmul.f32 0.1, %v873_v38  ;;  %vm947_vm7 = vcmp.ge.f32.partialorder %v873_v38, 0.0  ;;  %v954_v11 = vsel %vm946_vm8, %v871_v35, %v950_v57 }
 0x3d6   :  { %v953_v2 = vmul.f32 0.1, %v944_v41  ;;  %vm949_vm10 = vcmp.ge.f32.partialorder %v944_v41, 0.0  ;;  %v956_v45 = vsel %vm948_vm9, %v942_v36, %v952_v13 }
 0x3d7   :  { %v955_v14 = vsel %vm947_vm7, %v873_v38, %v951_v12 }
 0x3d8   :  { %1022 = vmatprep.mubr.f32.mxu0 %v955_v14  ;;  %v957_v49 = vsel %vm949_vm10, %v944_v41, %v953_v2 }
 0x3d9   :  { %1023 = vmatmul.mubr.f32.vlgmr.msra.gmra.mxu0 %v954_v11  ;;  %1092 = vmatprep.mubr.f32.mxu1 %v957_v49 }
 0x3da   :  { %1093 = vmatmul.mubr.f32.vlgmr.msra.gmra.mxu1 %v956_v45  ;;  %1388 = vmatprep.mubr.msk.f32.mxu0 %vm1527_vm11, %v1518_v4 }
 0x3db   :  { %1262 = vmatprep.mubr.f32.mxu1 %v1518_v4  ;;  %1379 = vmatpush1.msk.msra.mxu1 %vm1185_vm14, %v62_v26 }
 0x499   :  { %v1024_v59 = vpop.f32.mrf.mxu0 }
 0x49a   :  { %v1094_v22 = vpop.f32.mrf.mxu1 }
 0x49b   :  { %v1095_v21 = vadd.f32 %v1094_v22, %v1024_v59  ;;  %v1026_v56 = vpop.f32.mrf.mxu0 }
 0x49c   :  { %v1096_v20 = vpop.f32.mrf.mxu1 }
 0x49d   :  { %v1098_v3 = vmul.f32 0.00390625, %v1095_v21 }
 0x49f   :  { %1387 = vmatpush3.msk.msra.mxu0 %vm1107_vm12, %v1098_v3 }
 0x4a0   :  { %1389 = vmatmul.mubr.msk.f32.vlgmr.msra.gmra.mxu0 %vm1103_vm13, %v75_v47  ;;  %1381 = vmatprep.subr.msk.mxu0 %vm1185_vm14, %v65_v27 }
 0x4a1   :  { %1333 = vmatprep.mubr.f32.mxu0 %v1518_v4  ;;  %1382 = vmatpush1.msk.msra.mxu0 %vm1185_vm14, %v64_v32 }
 0x560   :  { %v1177_v54 = vpop.f32.mrf.mxu0 }
 0x561   :  { %v1178_v9 = vadd.f32 %v1177_v54, %v1101_v6 }
 0x562   :  { %v1390_v0 = vpop.f32.mrf.mxu0 }
 0x563   :  { %1380 = vmatmul.mubr.msk.f32.vlgmr.msra.gmra.mxu1 %vm1181_vm15, %v1178_v9  ;;  %1383 = vmatmul.mubr.msk.f32.vlgmr.msra.gmra.mxu0 %vm1181_vm15, %v1178_v9 }
 0x623   :  { %v1264_v48 = vpop.f32.mrf.mxu1  ;;  %v1335_v15 = vpop.f32.mrf.mxu0 }
 0x624   :  { %v1340_v53 = vadd.f32 %v1264_v48, %v954_v11  ;;  %v1342_v4 = vadd.f32 %v1335_v15, %v956_v45 }
 0x625   :  { %v1266_v42 = vpop.f32.mrf.mxu1  ;;  %v1337_v17 = vpop.f32.mrf.mxu0 }
 0x626   :  { %v1341_v25 = vadd.f32 %v1266_v42, %v955_v14  ;;  %v1343_v31 = vadd.f32 %v1337_v17, %v957_v49 }
 0x628   :  { %v1348_v40 = vcombine.low %v1340_v53, %v1341_v25  ;;  %v1349_v44 = vcombine.low %v1342_v4, %v1343_v31 }
 0x62a   :  { %1352 = vst [vmem:[#allocation8] sm:$0xff] %v1348_v40  ;;  %1353 = vst [vmem:[#allocation8 + $0x8] sm:$0xff] %v1349_v44 }
 0x62b   :  { %1491 = shalt.err (!%p1488_p5)
}
 0x62c   :  { %1363 = dma.vmem_to_hbm [thread:$0]  %s1361_s26, 256, %s1941_s5, [#allocation4]  }
 0x62d   :  { %1504 = dma.done.wait [#allocation4], 256  }
 0x62e   :  { %1505 = vsyncadd [#allocation4], 4294967040 }
 0x62f   :  { %1367 = vsyncpa [#allocation3], 1 }
 0x630   :  { %1368 = vsyncpa [#allocation6], 1 }
 0x631   :  { %1369 = vsyncpa [#allocation4], 1 }

</bundles_post_ra>
